<compile_context>
chip_gen: v6e
topology: v6e:2x2x1
jax: 0.10.0
libtpu: 0.0.40
codegen_flags: <defaults>
</compile_context>

<pallas_src>
import jax
import jax.numpy as jnp
from jax import lax
from jax.experimental import pallas as pl
from jax.experimental.pallas import tpu as pltpu

LANE = 128
# Big enough to amortize grid-step overhead, small enough that the
# (hidden, tile_b) f32 intermediate (~4 MiB) + double-buffered I/O stays far
# below the scoped-VMEM defaults on v5e (16 MiB) / v6e / v7x (32 MiB).
TILE_B_MAX = 8192


def _round_up(x, m):
    return ((x + m - 1) // m) * m


def _discriminator_kernel(xt_ref, w1_ref, b1_ref, w2_ref, b2_ref, o_ref):
    # xt_ref: (input_dim, tile_b)  -- batch on the lane axis
    # w1_ref: (hidden, input_dim)  -- PyTorch layout
    # b1_ref: (hidden, 1)
    # w2_ref: (1, hidden)
    # b2_ref: (1, 1)
    # o_ref : (1, tile_b)
    input_dim = xt_ref.shape[0]

    xt = xt_ref[...]                                   # (input_dim, tile_b)
    w1 = w1_ref[...]                                   # (hidden, input_dim)

    # ---- Layer 1: Linear(input_dim -> hidden) + ReLU (VPU) ------------------
    # K = input_dim is tiny (2): an MXU matmul would be >98% padding, so
    # unroll it into broadcast FMAs.  With batch on lanes, each x row
    # broadcasts over sublanes (cheap) and each w1 column broadcasts over
    # lanes once per k (tiny operand, hoisted by the compiler).
    h = w1[:, 0:1] * xt[0:1, :] + b1_ref[...]          # (hidden, tile_b)
    for k in range(1, input_dim):
        h = h + w1[:, k:k + 1] * xt[k:k + 1, :]
    h = jnp.maximum(h, 0.0)                            # ReLU

    # ---- Layer 2: Linear(hidden -> 1) on the (otherwise idle) MXU -----------
    # (1, hidden) @ (hidden, tile_b) -> (1, tile_b): the K=128 contraction
    # fills the MXU and directly produces the lane-dense output row.
    y = jnp.dot(w2_ref[...], h,
                preferred_element_type=jnp.float32,
                precision=lax.Precision.HIGHEST) + b2_ref[...]

    # ---- Sigmoid (exact: EUP exp + divide) -----------------------------------
    o_ref[...] = 1.0 / (1.0 + jnp.exp(-y))


def discriminator_forward(x, w1, b1, w2, b2, *, tile_b_max=TILE_B_MAX):
    """x: (B, input_dim) f32 -> (B, 1) f32, matching Discriminator.forward.

    Weights in PyTorch nn.Linear layout:
      w1: (hidden, input_dim), b1: (hidden,), w2: (1, hidden), b2: (1,)
    """
    B, input_dim = x.shape
    hidden = w1.shape[0]

    # Batch tile: a single lane-multiple step for tiny batches; otherwise at
    # least two grid steps (so v7x's two TensorCores both get work via the
    # "parallel" axis), capped at tile_b_max to amortize per-step overhead.
    if B <= 2 * LANE:
        tile_b = _round_up(B, LANE)
    else:
        tile_b = min(tile_b_max, _round_up(pl.cdiv(B, 2), LANE))
    b_pad = _round_up(B, tile_b)

    # Batch-on-lanes: feed x transposed as (input_dim, B); padding (if any)
    # only extends the lane axis of a 2-row array, so it is cheap.
    x_t = x.T
    if b_pad != B:
        x_t = jnp.pad(x_t, ((0, 0), (0, b_pad - B)))

    b1_col = b1.reshape(hidden, 1)
    w2_row = w2.reshape(1, hidden)
    b2_2d = b2.reshape(1, 1)

    out = pl.pallas_call(
        _discriminator_kernel,
        out_shape=jax.ShapeDtypeStruct((1, b_pad), jnp.float32),
        grid=(b_pad // tile_b,),
        in_specs=[
            pl.BlockSpec((input_dim, tile_b), lambda i: (0, i)),  # x tile
            pl.BlockSpec((hidden, input_dim), lambda i: (0, 0)),  # w1 resident
            pl.BlockSpec((hidden, 1), lambda i: (0, 0)),          # b1 resident
            pl.BlockSpec((1, hidden), lambda i: (0, 0)),          # w2 resident
            pl.BlockSpec((1, 1), lambda i: (0, 0)),               # b2 resident
        ],
        out_specs=pl.BlockSpec((1, tile_b), lambda i: (0, i)),
        compiler_params=pltpu.CompilerParams(
            dimension_semantics=("parallel",)),
    )(x_t, w1, b1_col, w2_row, b2_2d)

    # Lane-dense (1, b_pad) row -> (B, 1), dropping padded columns.
    return out.reshape(b_pad, 1)[:B]


if __name__ == "__main__":
    input_dim = 2
    hidden = 128

    key = jax.random.PRNGKey(0)
    kx, k1, k2, k3, k4, kx2 = jax.random.split(key, 6)

    # Deterministic synthetic parameters, PyTorch nn.Linear layout
    # (out_features, in_features).
    w1 = jax.random.normal(k1, (hidden, input_dim), jnp.float32) * 0.1
    b1 = jax.random.normal(k2, (hidden,), jnp.float32) * 0.1
    w2 = jax.random.normal(k3, (1, hidden), jnp.float32) * 0.1
    b2 = jax.random.normal(k4, (1,), jnp.float32) * 0.1

    def ref_fwd(x):
        h = jnp.maximum(x @ w1.T + b1, 0.0)
        y = jnp.dot(h, w2.T, precision=lax.Precision.HIGHEST) + b2
        return jax.nn.sigmoid(y)

    # Small demo batch (single grid step, batch padded to one 128-lane block).
    x_small = jax.random.normal(kx, (8, input_dim), jnp.float32)
    out_small = jax.block_until_ready(
        discriminator_forward(x_small, w1, b1, w2, b2))
    assert out_small.shape == (8, 1)
    assert jnp.allclose(out_small, ref_fwd(x_small), atol=1e-3, rtol=1e-3), \
        "mismatch vs reference (small batch)"

    # Larger batch exercising a 2-step "parallel" batch grid.
    x_big = jax.random.normal(kx2, (2304, input_dim), jnp.float32)
    out_big = jax.block_until_ready(
        discriminator_forward(x_big, w1, b1, w2, b2))
    assert out_big.shape == (2304, 1)
    assert jnp.allclose(out_big, ref_fwd(x_big), atol=1e-3, rtol=1e-3), \
        "mismatch vs reference (large batch)"

    print("KERNEL_OK")
</pallas_src>

<mosaic_0001>
module attributes {stable_mosaic.version = 11 : i64} {
  func.func @_discriminator_kernel(%arg0: i32, %arg1: memref<2x128xf32, #tpu.memory_space<vmem>>, %arg2: memref<128x2xf32, #tpu.memory_space<vmem>>, %arg3: memref<128x1xf32, #tpu.memory_space<vmem>>, %arg4: memref<1x128xf32, #tpu.memory_space<vmem>>, %arg5: memref<1x1xf32, #tpu.memory_space<vmem>>, %arg6: memref<1x128xf32, #tpu.memory_space<vmem>>) attributes {dimension_semantics = [#tpu.dimension_semantics<parallel>], iteration_bounds = array<i64: 1>, scalar_prefetch = 0 : i64, scratch_operands = 0 : i64, tpu.core_type = #tpu.core_type<tc>, window_params = [{transform_indices = @transform_0, window_bounds = array<i64: 2, 128>}, {pipeline_mode = #tpu.pipeline_mode<synchronous>, transform_indices = @transform_1, window_bounds = array<i64: 128, 2>}, {pipeline_mode = #tpu.pipeline_mode<synchronous>, transform_indices = @transform_2, window_bounds = array<i64: 128, 1>}, {pipeline_mode = #tpu.pipeline_mode<synchronous>, transform_indices = @transform_3, window_bounds = array<i64: 1, 128>}, {pipeline_mode = #tpu.pipeline_mode<synchronous>, transform_indices = @transform_4, window_bounds = array<i64: 1, 1>}, {transform_indices = @transform_5, window_bounds = array<i64: 1, 128>}]} {
    %c0 = arith.constant 0 : index
    %c0_0 = arith.constant 0 : index
    %0 = vector.load %arg1[%c0, %c0_0] : memref<2x128xf32, #tpu.memory_space<vmem>>, vector<2x128xf32>
    %c0_1 = arith.constant 0 : index
    %c0_2 = arith.constant 0 : index
    %1 = vector.load %arg2[%c0_1, %c0_2] : memref<128x2xf32, #tpu.memory_space<vmem>>, vector<128x2xf32>
    %2 = vector.extract_strided_slice %1 {offsets = [0, 0], sizes = [128, 1], strides = [1, 1]} : vector<128x2xf32> to vector<128x1xf32>
    %3 = vector.extract_strided_slice %0 {offsets = [0, 0], sizes = [1, 128], strides = [1, 1]} : vector<2x128xf32> to vector<1x128xf32>
    %4 = vector.broadcast %2 : vector<128x1xf32> to vector<128x128xf32>
    %5 = vector.broadcast %3 : vector<1x128xf32> to vector<128x128xf32>
    %6 = arith.mulf %4, %5 : vector<128x128xf32>
    %c0_3 = arith.constant 0 : index
    %c0_4 = arith.constant 0 : index
    %7 = vector.load %arg3[%c0_3, %c0_4] : memref<128x1xf32, #tpu.memory_space<vmem>>, vector<128x1xf32>
    %8 = vector.broadcast %7 : vector<128x1xf32> to vector<128x128xf32>
    %9 = arith.addf %6, %8 : vector<128x128xf32>
    %10 = vector.extract_strided_slice %1 {offsets = [0, 1], sizes = [128, 1], strides = [1, 1]} : vector<128x2xf32> to vector<128x1xf32>
    %11 = vector.extract_strided_slice %0 {offsets = [1, 0], sizes = [1, 128], strides = [1, 1]} : vector<2x128xf32> to vector<1x128xf32>
    %12 = vector.broadcast %10 : vector<128x1xf32> to vector<128x128xf32>
    %13 = vector.broadcast %11 : vector<1x128xf32> to vector<128x128xf32>
    %14 = arith.mulf %12, %13 : vector<128x128xf32>
    %15 = arith.addf %9, %14 : vector<128x128xf32>
    %cst = arith.constant 0.000000e+00 : f32
    %16 = vector.broadcast %cst : f32 to vector<128x128xf32>
    %17 = arith.maximumf %15, %16 : vector<128x128xf32>
    %c0_5 = arith.constant 0 : index
    %c0_6 = arith.constant 0 : index
    %18 = vector.load %arg4[%c0_5, %c0_6] : memref<1x128xf32, #tpu.memory_space<vmem>>, vector<1x128xf32>
    %cst_7 = arith.constant dense<0.000000e+00> : vector<1x128xf32>
    %19 = tpu.matmul %18, %17, %cst_7 {dimension_numbers = #tpu.dot_dimension_numbers<[1], [0], [0], [1], [0, 0, 1, 1], [], []>, precision = #tpu.contract_precision<fp32>} : vector<1x128xf32>, vector<128x128xf32>, vector<1x128xf32> -> vector<1x128xf32>
    %c0_8 = arith.constant 0 : index
    %c0_9 = arith.constant 0 : index
    %20 = vector.load %arg5[%c0_8, %c0_9] : memref<1x1xf32, #tpu.memory_space<vmem>>, vector<1x1xf32>
    %21 = vector.broadcast %20 : vector<1x1xf32> to vector<1x128xf32>
    %22 = arith.addf %19, %21 : vector<1x128xf32>
    %cst_10 = arith.constant 0.000000e+00 : f32
    %23 = vector.broadcast %cst_10 : f32 to vector<1x128xf32>
    %24 = arith.subf %23, %22 : vector<1x128xf32>
    %25 = math.exp %24 : vector<1x128xf32>
    %cst_11 = arith.constant 1.000000e+00 : f32
    %26 = vector.broadcast %cst_11 : f32 to vector<1x128xf32>
    %27 = arith.addf %26, %25 : vector<1x128xf32>
    %cst_12 = arith.constant 1.000000e+00 : f32
    %28 = vector.broadcast %cst_12 : f32 to vector<1x128xf32>
    %29 = arith.divf %28, %27 : vector<1x128xf32>
    %c0_13 = arith.constant 0 : index
    %c0_14 = arith.constant 0 : index
    %30 = vector.load %arg6[%c0_13, %c0_14] : memref<1x128xf32, #tpu.memory_space<vmem>>, vector<1x128xf32>
    tpu.vector_store %arg6[%c0_13, %c0_14], %29 {strides = array<i32>} : memref<1x128xf32, #tpu.memory_space<vmem>>, vector<1x128xf32>,
    return
  }
  func.func @transform_0(%arg0: i32) -> (i32, i32) {
    %c0_i32 = arith.constant 0 : i32
    %c0_i32_0 = arith.constant 0 : i32
    return %c0_i32, %arg0 : i32, i32
  }
  func.func @transform_1(%arg0: i32) -> (i32, i32) {
    %c0_i32 = arith.constant 0 : i32
    %c0_i32_0 = arith.constant 0 : i32
    %c0_i32_1 = arith.constant 0 : i32
    return %c0_i32, %c0_i32_0 : i32, i32
  }
  func.func @transform_2(%arg0: i32) -> (i32, i32) {
    %c0_i32 = arith.constant 0 : i32
    %c0_i32_0 = arith.constant 0 : i32
    %c0_i32_1 = arith.constant 0 : i32
    return %c0_i32, %c0_i32_0 : i32, i32
  }
  func.func @transform_3(%arg0: i32) -> (i32, i32) {
    %c0_i32 = arith.constant 0 : i32
    %c0_i32_0 = arith.constant 0 : i32
    %c0_i32_1 = arith.constant 0 : i32
    return %c0_i32, %c0_i32_0 : i32, i32
  }
  func.func @transform_4(%arg0: i32) -> (i32, i32) {
    %c0_i32 = arith.constant 0 : i32
    %c0_i32_0 = arith.constant 0 : i32
    %c0_i32_1 = arith.constant 0 : i32
    return %c0_i32, %c0_i32_0 : i32, i32
  }
  func.func @transform_5(%arg0: i32) -> (i32, i32) {
    %c0_i32 = arith.constant 0 : i32
    %c0_i32_0 = arith.constant 0 : i32
    return %c0_i32, %arg0 : i32, i32
  }
}

</mosaic_0001>

<bundles_post_ra>
// kernel: tpu_custom_call.1
= control target key start
LH: loop header
LB: loop body
LE: loop exit
PB: predicated region body
PF: predicated region fallthrough
CT: control target
= control target key end

     0   :  { %s1985_s0 = inlined_call_operand.vmem [shape: f32[2,128], index: 0, kind: input, shape index: {}]   ;;  %s1986_s1 = inlined_call_operand.vmem [shape: f32[128,2], index: 1, kind: input, shape index: {}]   ;;  %s1987_s2 = inlined_call_operand.vmem [shape: f32[128,1], index: 2, kind: input, shape index: {}]   ;;  %s1988_s3 = inlined_call_operand.vmem [shape: f32[1,128], index: 3, kind: input, shape index: {}]   ;;  %s1989_s4 = inlined_call_operand.<no memory space> [shape: f32[1,1], index: 4, kind: input, shape index: {}]   ;;  %s1990_s5 = inlined_call_operand.hbm [shape: f32[1,128], index: 5, kind: output, shape index: {}]  }
   0x1   :  { %v10_v0 = vstv %s1989_s4 }
   0x2   :  { %11 = vst [vmem:[#allocation2] sm:$0x1] %v10_v0 }
   0x3   :  { %v155_v1 = vld [vmem:[%s1987_s2 + $0x78] sm:$0xff]  ;;  %v1402_v3 = vmov 0   ;;  %v38_v4 = vld [vmem:[%s1986_s1 + $0x70] sm:$0xff]  ;;  %v1403_v5 = vmov 1   ;;  %v37_v6 = vld [vmem:[%s1986_s1 + $0x68] sm:$0xff]  ;;  %v1404_v8 = vmov 0.0  }
   0x4   :  { %v39_v2 = vld [vmem:[%s1986_s1 + $0x78] sm:$0xff]  ;;  %1359 = vset.pattern.permute.xlu1 %v1402_v3  ;;  %1358 = vset.pattern.permute.xlu0 %v1402_v3  ;;  %v154_v7 = vld [vmem:[%s1987_s2 + $0x70] sm:$0xff]  ;;  %v152_v9 = vld [vmem:[%s1987_s2 + $0x60] sm:$0xff] }
   0x5   :  { %233 = vperm.xlu1 %1359, %v155_v1   ;;  %117 = vperm.xlu0 %1358, %v39_v2  }
   0x6   :  { %1143 = vmatprep.subr.mxu0 %v1404_v8  ;;  %1178 = vmatprep.subr.mxu1 %v1404_v8 }
   0x9   :  { %1360 = vset.pattern.permute.xlu1 %v1403_v5  ;;  %112 = vperm.xlu0 %1358, %v38_v4  }
   0xa   :  { %313 = vperm.xlu1 %1360, %v39_v2  }
   0xd   :  { %107 = vperm.xlu0 %1358, %v37_v6  }
   0xe   :  { %1361 = vset.pattern.permute.xlu1 %v1402_v3 }
   0xf   :  { %12 = vsyncpa [#allocation4], 0  ;;  %228 = vperm.xlu1 %1361, %v154_v7   ;;  %v36_v10 = vld [vmem:[%s1986_s1 + $0x60] sm:$0xff]  ;;  %v151_v11 = vld [vmem:[%s1987_s2 + $0x58] sm:$0xff]  ;;  %v120_v34 = vlaneseq  ;;  %vm1405_vm0 = vmmov 0  }
  0x10   :  { %v153_v12 = vld [vmem:[%s1987_s2 + $0x68] sm:$0xff]  ;;  %v35_v14 = vld [vmem:[%s1986_s1 + $0x58] sm:$0xff]  ;;  %v148_v15 = vld [vmem:[%s1987_s2 + $0x40] sm:$0xff]  ;;  %1175 = vmatprep.mubr.msk.f32.mxu0 %vm1405_vm0, %v1404_v8  ;;  %1210 = vmatprep.mubr.msk.f32.mxu1 %vm1405_vm0, %v1404_v8 }
  0x11   :  { %218 = vperm.xlu0 %1358, %v152_v9   ;;  %v33_v13 = vld [vmem:[%s1986_s1 + $0x48] sm:$0xff]  ;;  %v147_v16 = vld [vmem:[%s1987_s2 + $0x38] sm:$0xff]  ;;  %v34_v17 = vld [vmem:[%s1986_s1 + $0x50] sm:$0xff]  ;;  %v1553_v36 = vshrl.u32 %v120_v34, 7 }
  0x12   :  { %v29_v18 = vld [vmem:[%s1986_s1 + $0x28] sm:$0xff]  ;;  %v144_v19 = vld [vmem:[%s1987_s2 + $0x20] sm:$0xff]  ;;  %v143_v20 = vld [vmem:[%s1987_s2 + $0x18] sm:$0xff] }
  0x13   :  { %102 = vperm.xlu1 %1361, %v36_v10   ;;  %v150_v21 = vld [vmem:[%s1987_s2 + $0x50] sm:$0xff]  ;;  %v25_v22 = vld [vmem:[%s1986_s1 + $0x8] sm:$0xff]  ;;  %v32_v23 = vld [vmem:[%s1986_s1 + $0x40] sm:$0xff]  ;;  %v122_v38 = vsub.s32 0, %v1553_v36  ;;  %v318_v42 = vsub.s32 1, %v1553_v36 }
  0x14   :  { %v149_v24 = vld [vmem:[%s1987_s2 + $0x48] sm:$0xff]  ;;  %v31_v25 = vld [vmem:[%s1986_s1 + $0x38] sm:$0xff]  ;;  %v30_v26 = vld [vmem:[%s1986_s1 + $0x30] sm:$0xff] }
  0x15   :  { %213 = vperm.xlu0 %1358, %v151_v11   ;;  %v26_v27 = vld [vmem:[%s1986_s1 + $0x10] sm:$0xff]  ;;  %v28_v29 = vld [vmem:[%s1986_s1 + $0x20] sm:$0xff]  ;;  %v145_v31 = vld [vmem:[%s1987_s2 + $0x28] sm:$0xff] }
  0x16   :  { %v146_v28 = vld [vmem:[%s1987_s2 + $0x30] sm:$0xff]  ;;  %v24_v30 = vld [vmem:[%s1986_s1] sm:$0xff]  ;;  %v27_v32 = vld [vmem:[%s1986_s1 + $0x18] sm:$0xff] }
  0x17   :  { %223 = vperm.xlu1 %1361, %v153_v12   ;;  %v142_v33 = vld [vmem:[%s1987_s2 + $0x10] sm:$0xff]  ;;  %v141_v35 = vld [vmem:[%s1987_s2 + $0x8] sm:$0xff]  ;;  %v140_v37 = vld [vmem:[%s1987_s2] sm:$0xff] }
  0x18   :  { %v23_v39 = vld [vmem:[%s1985_s0] sm:$0x3] }
  0x19   :  { %87 = vperm.xlu0 %1358, %v33_v13   ;;  %v369_v40 = vld [vmem:[#allocation2] sm:$0x1]  ;;  %v1564_v41 = vrot.slane %v23_v39, %v122_v38  ;;  %v1572_v46 = vrot.slane %v23_v39, %v318_v42 }
  0x1b   :  { %97 = vperm.xlu1 %1361, %v35_v14  }
  0x1d   :  { %198 = vperm.xlu0 %1358, %v148_v15  }
  0x1f   :  { %1362 = vset.pattern.permute.xlu1 %v1403_v5 }
  0x20   :  { %301 = vperm.xlu1 %1362, %v36_v10  }
  0x21   :  { %193 = vperm.xlu0 %1358, %v147_v16  }
  0x24   :  { %1363 = vset.pattern.permute.xlu1 %v1402_v3 }
  0x25   :  { %92 = vperm.xlu1 %1363, %v34_v17   ;;  %67 = vperm.xlu0 %1358, %v29_v18  }
  0x29   :  { %1364 = vset.pattern.permute.xlu1 %v1403_v5  ;;  %178 = vperm.xlu0 %1358, %v144_v19  }
  0x2a   :  { %297 = vperm.xlu1 %1364, %v35_v14  }
  0x2d   :  { %173 = vperm.xlu0 %1358, %v143_v20  }
  0x2e   :  { %1365 = vset.pattern.permute.xlu1 %v1402_v3 }
  0x2f   :  { %208 = vperm.xlu1 %1365, %v150_v21  }
  0x31   :  { %47 = vperm.xlu0 %1358, %v25_v22  }
  0x33   :  { %82 = vperm.xlu1 %1365, %v32_v23  }
  0x35   :  { %1373 = vset.pattern.permute.xlu0 %v1403_v5 }
  0x36   :  { %309 = vperm.xlu0 %1373, %v38_v4  }
  0x37   :  { %203 = vperm.xlu1 %1365, %v149_v24  }
  0x3a   :  { %305 = vperm.xlu0 %1373, %v37_v6  }
  0x3b   :  { %77 = vperm.xlu1 %1365, %v31_v25  }
  0x3e   :  { %293 = vperm.xlu0 %1373, %v34_v17  }
  0x3f   :  { %1366 = vset.pattern.permute.xlu1 %v1403_v5 }
  0x40   :  { %285 = vperm.xlu1 %1366, %v32_v23  }
  0x42   :  { %289 = vperm.xlu0 %1373, %v33_v13  }
  0x44   :  { %1367 = vset.pattern.permute.xlu1 %v1402_v3 }
  0x45   :  { %72 = vperm.xlu1 %1367, %v30_v26  }
  0x46   :  { %277 = vperm.xlu0 %1373, %v30_v26  }
  0x49   :  { %1368 = vset.pattern.permute.xlu1 %v1403_v5 }
  0x4a   :  { %281 = vperm.xlu1 %1368, %v31_v25   ;;  %273 = vperm.xlu0 %1373, %v29_v18  }
  0x4e   :  { %1369 = vset.pattern.permute.xlu1 %v1402_v3  ;;  %261 = vperm.xlu0 %1373, %v26_v27  }
  0x4f   :  { %188 = vperm.xlu1 %1369, %v146_v28  }
  0x52   :  { %257 = vperm.xlu0 %1373, %v25_v22  }
  0x53   :  { %62 = vperm.xlu1 %1369, %v28_v29  }
  0x56   :  { %253 = vperm.xlu0 %1373, %v24_v30  }
  0x57   :  { %183 = vperm.xlu1 %1369, %v145_v31  }
  0x5a   :  { %1375 = vset.pattern.permute.xlu0 %v1402_v3 }
  0x5b   :  { %57 = vperm.xlu1 %1369, %v27_v32  }
  0x5f   :  { %1370 = vset.pattern.permute.xlu1 %v1403_v5 }
  0x60   :  { %269 = vperm.xlu1 %1370, %v28_v29  }
  0x64   :  { %1371 = vset.pattern.permute.xlu1 %v1402_v3 }
  0x65   :  { %52 = vperm.xlu1 %1371, %v26_v27  }
  0x69   :  { %1372 = vset.pattern.permute.xlu1 %v1403_v5 }
  0x6a   :  { %265 = vperm.xlu1 %1372, %v27_v32  }
  0x6e   :  { %1374 = vset.pattern.permute.xlu1 %v1402_v3 }
  0x6f   :  { %168 = vperm.xlu1 %1374, %v142_v33  }
  0x73   :  { %42 = vperm.xlu1 %1374, %v24_v30  }
  0x77   :  { %163 = vperm.xlu1 %1374, %v141_v35  }
  0x7b   :  { %158 = vperm.xlu1 %1374, %v140_v37  }
  0x7f   :  { %372 = vperm.xlu1 %1374, %v369_v40  }
  0x80   :  { %v234_v43 = vpop.permute.xlu1 %233  ;;  %v118_v44 = vpop.permute.xlu0 %117 }
  0x81   :  { %v139_v45 = vmul.f32 %v1564_v41, %v118_v44 }
  0x83   :  { %v251_v49 = vadd.f32 %v234_v43, %v139_v45 }
  0x84   :  { %v113_v47 = vpop.permute.xlu0 %112 }
  0x85   :  { %v314_v48 = vpop.permute.xlu1 %313  ;;  %v138_v18 = vmul.f32 %v1564_v41, %v113_v47 }
  0x86   :  { %v335_v50 = vmul.f32 %v1572_v46, %v314_v48 }
  0x88   :  { %v351_v51 = vadd.f32 %v335_v50, %v251_v49  ;;  %v108_v52 = vpop.permute.xlu0 %107 }
  0x89   :  { %v137_v24 = vmul.f32 %v1564_v41, %v108_v52 }
  0x8a   :  { %v367_v53 = vmax.f32 %v351_v51, 0.0  ;;  %v229_v54 = vpop.permute.xlu1 %228 }
  0x8b   :  { %v250_v25 = vadd.f32 %v229_v54, %v138_v18 }
  0x8c   :  { %v1575_v55 = vand.u32 4294901760, %v367_v53  ;;  %v219_v56 = vpop.permute.xlu0 %218 }
  0x8e   :  { %v1578_v57 = vsub.f32 %v367_v53, %v1575_v55  ;;  %v103_v58 = vpop.permute.xlu1 %102  ;;  %1144 = vmatpush3.msra.mxu0 %v1575_v55 }
  0x8f   :  { %1145 = vmatprep.subr.mxu0 %v1404_v8  ;;  %v136_v11 = vmul.f32 %v1564_v41, %v103_v58 }
  0x90   :  { %v214_v59 = vpop.permute.xlu0 %213  ;;  %v473_v60 = vand.u32 4294901760, %v1578_v57 }
  0x91   :  { %v248_v16 = vadd.f32 %v219_v56, %v136_v11 }
  0x92   :  { %v224_v61 = vpop.permute.xlu1 %223  ;;  %v474_v62 = vsub.f32 %v1578_v57, %v473_v60 }
  0x93   :  { %v249_v32 = vadd.f32 %v224_v61, %v137_v24 }
  0x94   :  { %v88_v63 = vpop.permute.xlu0 %87  ;;  %v475_v0 = vand.u32 4294901760, %v474_v62 }
  0x95   :  { %v133_v51 = vmul.f32 %v1564_v41, %v88_v63 }
  0x96   :  { %v98_v1 = vpop.permute.xlu1 %97  ;;  %1179 = vmatpush3.msra.mxu1 %v475_v0 }
  0x97   :  { %1180 = vmatprep.subr.mxu1 %v1404_v8  ;;  %v135_v13 = vmul.f32 %v1564_v41, %v98_v1 }
  0x98   :  { %v199_v2 = vpop.permute.xlu0 %198 }
  0x99   :  { %v247_v20 = vadd.f32 %v214_v59, %v135_v13 }
  0x9b   :  { %v302_v3 = vpop.permute.xlu1 %301 }
  0x9c   :  { %v1587_v4 = vpop.permute.xlu0 %193  ;;  %v332_v14 = vmul.f32 %v1572_v46, %v302_v3 }
  0x9e   :  { %v348_v21 = vadd.f32 %v332_v14, %v248_v16 }
  0xa0   :  { %v93_v5 = vpop.permute.xlu1 %92  ;;  %v1589_v6 = vpop.permute.xlu0 %67  ;;  %v364_v28 = vmax.f32 %v348_v21, 0.0 }
  0xa1   :  { %v134_v40 = vmul.f32 %v1564_v41, %v93_v5 }
  0xa2   :  { %v1605_v37 = vand.u32 4294901760, %v364_v28 }
  0xa4   :  { %v1591_v7 = vpop.permute.xlu0 %178  ;;  %v1620_v52 = vsub.f32 %v364_v28, %v1605_v37 }
  0xa5   :  { %v298_v9 = vpop.permute.xlu1 %297 }
  0xa6   :  { %v331_v17 = vmul.f32 %v1572_v46, %v298_v9  ;;  %v494_v11 = vand.u32 4294901760, %v1620_v52 }
  0xa8   :  { %v1593_v10 = vpop.permute.xlu0 %173  ;;  %v347_v22 = vadd.f32 %v331_v17, %v247_v20 }
  0xaa   :  { %v209_v12 = vpop.permute.xlu1 %208  ;;  %v363_v30 = vmax.f32 %v347_v22, 0.0 }
  0xab   :  { %v246_v47 = vadd.f32 %v209_v12, %v134_v40 }
  0xac   :  { %v1598_v15 = vpop.permute.xlu0 %47  ;;  %v1611_v44 = vand.u32 4294901760, %v363_v30 }
  0xae   :  { %v83_v19 = vpop.permute.xlu1 %82  ;;  %v1628_v62 = vsub.f32 %v363_v30, %v1611_v44 }
  0xaf   :  { %v132_v39 = vmul.f32 %v1564_v41, %v83_v19 }
  0xb0   :  { %v501_v19 = vand.u32 4294901760, %v1628_v62 }
  0xb1   :  { %v310_v23 = vpop.permute.xlu0 %309  ;;  %v244_v53 = vadd.f32 %v199_v2, %v132_v39 }
  0xb2   :  { %v334_v26 = vmul.f32 %v1572_v46, %v310_v23  ;;  %v204_v27 = vpop.permute.xlu1 %203 }
  0xb3   :  { %v245_v0 = vadd.f32 %v204_v27, %v133_v51 }
  0xb4   :  { %v350_v29 = vadd.f32 %v334_v26, %v250_v25  ;;  %v495_v25 = vsub.f32 %v1620_v52, %v494_v11 }
  0xb5   :  { %v306_v31 = vpop.permute.xlu0 %305 }
  0xb6   :  { %v366_v33 = vmax.f32 %v350_v29, 0.0  ;;  %v333_v34 = vmul.f32 %v1572_v46, %v306_v31  ;;  %v78_v35 = vpop.permute.xlu1 %77  ;;  %v502_v31 = vsub.f32 %v1628_v62, %v501_v19 }
  0xb7   :  { %v131_v20 = vmul.f32 %v1564_v41, %v78_v35  ;;  %v496_v35 = vand.u32 4294901760, %v495_v25 }
  0xb8   :  { %v1609_v42 = vand.u32 4294901760, %v366_v33  ;;  %v349_v43 = vadd.f32 %v333_v34, %v249_v32 }
  0xb9   :  { %v294_v45 = vpop.permute.xlu0 %293  ;;  %v243_v32 = vadd.f32 %v1587_v4, %v131_v20  ;;  %v129_v20 = vmul.f32 %v1564_v41, %v1589_v6 }
  0xba   :  { %v1614_v48 = vsub.f32 %v366_v33, %v1609_v42  ;;  %v365_v49 = vmax.f32 %v349_v43, 0.0  ;;  %v330_v50 = vmul.f32 %v1572_v46, %v294_v45  ;;  %1146 = vmatpush3.msra.mxu0 %v1609_v42 }
  0xbb   :  { %v286_v54 = vpop.permute.xlu1 %285  ;;  %1147 = vmatprep.subr.mxu0 %v1404_v8 }
  0xbc   :  { %v1623_v56 = vand.u32 4294901760, %v365_v49  ;;  %v346_v58 = vadd.f32 %v330_v50, %v246_v47  ;;  %v328_v59 = vmul.f32 %v1572_v46, %v286_v54  ;;  %v480_v61 = vand.u32 4294901760, %v1614_v48 }
  0xbd   :  { %v290_v1 = vpop.permute.xlu0 %289  ;;  %v503_v50 = vand.u32 4294901760, %v502_v31 }
  0xbe   :  { %v1631_v63 = vsub.f32 %v365_v49, %v1623_v56  ;;  %v362_v3 = vmax.f32 %v346_v58, 0.0  ;;  %v344_v2 = vadd.f32 %v328_v59, %v244_v53  ;;  %v329_v5 = vmul.f32 %v1572_v46, %v290_v1  ;;  %1148 = vmatpush3.msra.mxu0 %v1623_v56 }
  0xbf   :  { %1149 = vmatprep.subr.mxu0 %v1404_v8  ;;  %v481_v9 = vsub.f32 %v1614_v48, %v480_v61 }
  0xc0   :  { %v1640_v12 = vand.u32 4294901760, %v362_v3  ;;  %v360_v13 = vmax.f32 %v344_v2, 0.0  ;;  %v345_v14 = vadd.f32 %v329_v5, %v245_v0  ;;  %v73_v16 = vpop.permute.xlu1 %72  ;;  %1150 = vmatpush3.msra.mxu0 %v1605_v37  ;;  %v487_v17 = vand.u32 4294901760, %v1631_v63 }
  0xc1   :  { %1151 = vmatprep.subr.mxu0 %v1404_v8  ;;  %v482_v18 = vand.u32 4294901760, %v481_v9  ;;  %v278_v45 = vpop.permute.xlu0 %277  ;;  %v130_v47 = vmul.f32 %v1564_v41, %v73_v16 }
  0xc2   :  { %v1648_v21 = vsub.f32 %v362_v3, %v1640_v12  ;;  %v1650_v22 = vand.u32 4294901760, %v360_v13  ;;  %v361_v23 = vmax.f32 %v345_v14, 0.0  ;;  %1152 = vmatpush3.msra.mxu0 %v1611_v44  ;;  %v488_v24 = vsub.f32 %v1631_v63, %v487_v17 }
  0xc3   :  { %1181 = vmatpush3.msra.mxu1 %v482_v18  ;;  %1153 = vmatprep.subr.mxu0 %v1404_v8  ;;  %v326_v49 = vmul.f32 %v1572_v46, %v278_v45 }
  0xc4   :  { %v1661_v26 = vsub.f32 %v360_v13, %v1650_v22  ;;  %v1663_v27 = vand.u32 4294901760, %v361_v23  ;;  %1154 = vmatpush3.msra.mxu0 %v1640_v12  ;;  %1182 = vmatprep.subr.mxu1 %v1404_v8  ;;  %v508_v28 = vand.u32 4294901760, %v1648_v21  ;;  %v489_v30 = vand.u32 4294901760, %v488_v24 }
  0xc5   :  { %v282_v29 = vpop.permute.xlu1 %281  ;;  %1155 = vmatprep.subr.mxu0 %v1404_v8  ;;  %v274_v16 = vpop.permute.xlu0 %273 }
  0xc6   :  { %v1674_v33 = vsub.f32 %v361_v23, %v1663_v27  ;;  %v327_v34 = vmul.f32 %v1572_v46, %v282_v29  ;;  %1156 = vmatpush3.msra.mxu0 %v1663_v27  ;;  %1183 = vmatpush3.msra.mxu1 %v489_v30  ;;  %v509_v39 = vsub.f32 %v1648_v21, %v508_v28  ;;  %v522_v40 = vand.u32 4294901760, %v1661_v26 }
  0xc7   :  { %1157 = vmatprep.subr.mxu0 %v1404_v8  ;;  %1184 = vmatprep.subr.mxu1 %v1404_v8  ;;  %v325_v24 = vmul.f32 %v1572_v46, %v274_v16 }
  0xc8   :  { %v343_v43 = vadd.f32 %v327_v34, %v243_v32  ;;  %1158 = vmatpush3.msra.mxu0 %v1650_v22  ;;  %v515_v4 = vand.u32 4294901760, %v1674_v33  ;;  %1185 = vmatpush3.msra.mxu1 %v496_v35  ;;  %v510_v59 = vand.u32 4294901760, %v509_v39  ;;  %v523_v0 = vsub.f32 %v1661_v26, %v522_v40 }
  0xc9   :  { %1159 = vmatprep.subr.mxu0 %v1404_v8  ;;  %1186 = vmatprep.subr.mxu1 %v1404_v8 }
  0xca   :  { %v359_v51 = vmax.f32 %v343_v43, 0.0  ;;  %v189_v53 = vpop.permute.xlu1 %188  ;;  %v516_v54 = vsub.f32 %v1674_v33, %v515_v4  ;;  %1187 = vmatpush3.msra.mxu1 %v503_v50  ;;  %v524_v14 = vand.u32 4294901760, %v523_v0 }
  0xcb   :  { %v242_v58 = vadd.f32 %v189_v53, %v130_v47  ;;  %1188 = vmatprep.subr.mxu1 %v1404_v8 }
  0xcc   :  { %v1696_v1 = vand.u32 4294901760, %v359_v51  ;;  %v517_v3 = vand.u32 4294901760, %v516_v54  ;;  %1189 = vmatpush3.msra.mxu1 %v510_v59 }
  0xcd   :  { %v342_v2 = vadd.f32 %v326_v49, %v242_v58  ;;  %1190 = vmatprep.subr.mxu1 %v1404_v8 }
  0xce   :  { %v1700_v5 = vsub.f32 %v359_v51, %v1696_v1  ;;  %v63_v9 = vpop.permute.xlu1 %62  ;;  %1160 = vmatpush3.msra.mxu0 %v1696_v1  ;;  %1191 = vmatpush3.msra.mxu1 %v517_v3 }
  0xcf   :  { %v358_v13 = vmax.f32 %v342_v2, 0.0  ;;  %1161 = vmatprep.subr.mxu0 %v1404_v8  ;;  %1192 = vmatprep.subr.mxu1 %v1404_v8  ;;  %v128_v45 = vmul.f32 %v1564_v41, %v63_v9 }
  0xd0   :  { %v529_v18 = vand.u32 4294901760, %v1700_v5  ;;  %1193 = vmatpush3.msra.mxu1 %v524_v14 }
  0xd1   :  { %v1709_v23 = vand.u32 4294901760, %v358_v13  ;;  %1194 = vmatprep.subr.mxu1 %v1404_v8  ;;  %v240_v53 = vadd.f32 %v1591_v7, %v128_v45 }
  0xd2   :  { %v184_v25 = vpop.permute.xlu1 %183  ;;  %v530_v29 = vsub.f32 %v1700_v5, %v529_v18 }
  0xd3   :  { %v1717_v30 = vsub.f32 %v358_v13, %v1709_v23  ;;  %v241_v31 = vadd.f32 %v184_v25, %v129_v20  ;;  %1162 = vmatpush3.msra.mxu0 %v1709_v23 }
  0xd4   :  { %v531_v32 = vand.u32 4294901760, %v530_v29  ;;  %1163 = vmatprep.subr.mxu0 %v1404_v8  ;;  %v262_v29 = vpop.permute.xlu0 %261 }
  0xd5   :  { %v341_v6 = vadd.f32 %v325_v24, %v241_v31  ;;  %v536_v34 = vand.u32 4294901760, %v1717_v30 }
  0xd6   :  { %v58_v35 = vpop.permute.xlu1 %57  ;;  %1195 = vmatpush3.msra.mxu1 %v531_v32 }
  0xd7   :  { %v357_v39 = vmax.f32 %v341_v6, 0.0  ;;  %1196 = vmatprep.subr.mxu1 %v1404_v8  ;;  %v537_v43 = vsub.f32 %v1717_v30, %v536_v34  ;;  %v127_v13 = vmul.f32 %v1564_v41, %v58_v35  ;;  %v368_v35 = vld [vmem:[%s1988_s3] sm:$0x1]  ;;  %s1406_s3 = smov [#allocation3]  }
  0xd8   :  { %s1033_s7 = sshll.u32 %s1406_s3, 4  ;;  %s1034_s7 = int_to_ptr.vmem [resolvable:$true] %s1033_s7 }
  0xd9   :  { %v1727_v47 = vand.u32 4294901760, %v357_v39  ;;  %v538_v49 = vand.u32 4294901760, %v537_v43  ;;  %v239_v20 = vadd.f32 %v1593_v10, %v127_v13  ;;  %v322_v10 = vmul.f32 %v1572_v46, %v262_v29  ;;  %s1380_s8 = scalar_lea.vmem %s1034_s7, 16  ;;  %s1384_s9 = scalar_lea.vmem %s1034_s7, 32 }
  0xda   :  { %p1381_p0 = scmp.ne.s32.totalorder %s1034_s7, %s1380_s8  ;;  %p1385_p1 = scmp.lt.s32.totalorder %s1034_s7, %s1034_s7 }
  0xdb   :  { %v1730_v50 = vsub.f32 %v357_v39, %v1727_v47  ;;  %v270_v51 = vpop.permute.xlu1 %269  ;;  %1164 = vmatpush3.msra.mxu0 %v1727_v47  ;;  %1197 = vmatpush3.msra.mxu1 %v538_v49  ;;  %p1386_p2 = scmp.lt.s32.totalorder %s1384_s9, %s1380_s8 }
  0xdc   :  { %v324_v54 = vmul.f32 %v1572_v46, %v270_v51  ;;  %1198 = vmatprep.subr.mxu1 %v1404_v8  ;;  %1165 = vmatprep.subr.mxu0 %v1404_v8 }
  0xdd   :  { %v543_v58 = vand.u32 4294901760, %v1730_v50  ;;  %p1387_p3 = por %p1386_p2, %p1385_p1 }
  0xde   :  { %v340_v59 = vadd.f32 %v324_v54, %v240_v53  ;;  %v1763_v53 = vand.u32 4294901760, %v368_v35 }
  0xdf   :  { %v544_v0 = vsub.f32 %v1730_v50, %v543_v58  ;;  %p1388_p4 = pnand %p1387_p3, %p1381_p0 }
  0xe0   :  { %v356_v3 = vmax.f32 %v340_v59, 0.0  ;;  %v53_v2 = vpop.permute.xlu1 %52  ;;  %v258_v59 = vpop.permute.xlu0 %257  ;;  %v1773_v13 = vsub.f32 %v368_v35, %v1763_v53 }
  0xe1   :  { %v545_v9 = vand.u32 4294901760, %v544_v0  ;;  %v126_v6 = vmul.f32 %v1564_v41, %v53_v2 }
  0xe2   :  { %v1742_v14 = vand.u32 4294901760, %v356_v3 }
  0xe3   :  { %1199 = vmatpush3.msra.mxu1 %v545_v9 }
  0xe4   :  { %v1745_v7 = vsub.f32 %v356_v3, %v1742_v14  ;;  %1166 = vmatpush3.msra.mxu0 %v1742_v14  ;;  %1200 = vmatprep.subr.mxu1 %v1404_v8  ;;  %v254_v35 = vpop.permute.xlu0 %253 }
  0xe5   :  { %v266_v16 = vpop.permute.xlu1 %265  ;;  %1167 = vmatprep.subr.mxu0 %v1404_v8 }
  0xe6   :  { %v323_v24 = vmul.f32 %v1572_v46, %v266_v16  ;;  %v550_v25 = vand.u32 4294901760, %v1745_v7  ;;  %v125_v16 = vmul.f32 %v1564_v41, %v1598_v15  ;;  %v462_v15 = vand.u32 4294901760, %v1773_v13 }
  0xe8   :  { %v339_v31 = vadd.f32 %v323_v24, %v239_v20  ;;  %v551_v32 = vsub.f32 %v1745_v7, %v550_v25 }
  0xea   :  { %v355_v39 = vmax.f32 %v339_v31, 0.0  ;;  %v169_v43 = vpop.permute.xlu1 %168  ;;  %v552_v45 = vand.u32 4294901760, %v551_v32  ;;  %v321_v31 = vmul.f32 %v1572_v46, %v258_v59 }
  0xeb   :  { %v238_v49 = vadd.f32 %v169_v43, %v126_v6 }
  0xec   :  { %v1761_v51 = vand.u32 4294901760, %v355_v39  ;;  %1201 = vmatpush3.msra.mxu1 %v552_v45 }
  0xed   :  { %v338_v54 = vadd.f32 %v322_v10, %v238_v49  ;;  %1202 = vmatprep.subr.mxu1 %v1404_v8 }
  0xee   :  { %v1767_v0 = vsub.f32 %v355_v39, %v1761_v51  ;;  %v43_v3 = vpop.permute.xlu1 %42  ;;  %1168 = vmatpush3.msra.mxu0 %v1761_v51 }
  0xef   :  { %v354_v2 = vmax.f32 %v338_v54, 0.0  ;;  %1169 = vmatprep.subr.mxu0 %v1404_v8  ;;  %v124_v43 = vmul.f32 %v1564_v41, %v43_v3  ;;  %v320_v54 = vmul.f32 %v1572_v46, %v254_v35 }
  0xf0   :  { %v557_v9 = vand.u32 4294901760, %v1767_v0 }
  0xf1   :  { %v1777_v20 = vand.u32 4294901760, %v354_v2 }
  0xf2   :  { %v164_v24 = vpop.permute.xlu1 %163  ;;  %v558_v29 = vsub.f32 %v1767_v0, %v557_v9 }
  0xf3   :  { %v1784_v32 = vsub.f32 %v354_v2, %v1777_v20  ;;  %v237_v6 = vadd.f32 %v164_v24, %v125_v16  ;;  %1170 = vmatpush3.msra.mxu0 %v1777_v20  ;;  %v463_v24 = vsub.f32 %v1773_v13, %v462_v15 }
  0xf4   :  { %v559_v39 = vand.u32 4294901760, %v558_v29  ;;  %1171 = vmatprep.subr.mxu0 %v1404_v8 }
  0xf5   :  { %v337_v45 = vadd.f32 %v321_v31, %v237_v6  ;;  %v564_v10 = vand.u32 4294901760, %v1784_v32  ;;  %v464_v6 = vand.u32 4294901760, %v463_v24 }
  0xf6   :  { %v159_v49 = vpop.permute.xlu1 %158  ;;  %1203 = vmatpush3.msra.mxu1 %v559_v39 }
  0xf7   :  { %v353_v59 = vmax.f32 %v337_v45, 0.0  ;;  %v236_v2 = vadd.f32 %v159_v49, %v124_v43  ;;  %1204 = vmatprep.subr.mxu1 %v1404_v8  ;;  %v565_v16 = vsub.f32 %v1784_v32, %v564_v10 }
  0xf9   :  { %v1799_v41 = vand.u32 4294901760, %v353_v59  ;;  %v336_v3 = vadd.f32 %v320_v54, %v236_v2  ;;  %v566_v29 = vand.u32 4294901760, %v565_v16 }
  0xfb   :  { %v1802_v31 = vsub.f32 %v353_v59, %v1799_v41  ;;  %v352_v46 = vmax.f32 %v336_v3, 0.0  ;;  %1172 = vmatpush3.msra.mxu0 %v1799_v41  ;;  %1205 = vmatpush3.msra.mxu1 %v566_v29 }
  0xfc   :  { %1173 = vmatprep.subr.mxu0 %v1404_v8  ;;  %1206 = vmatprep.subr.mxu1 %v1404_v8 }
  0xfd   :  { %v1807_v35 = vand.u32 4294901760, %v352_v46  ;;  %v571_v39 = vand.u32 4294901760, %v1802_v31 }
  0xff   :  { %v1811_v43 = vsub.f32 %v352_v46, %v1807_v35  ;;  %1174 = vmatpush3.msra.mxu0 %v1807_v35  ;;  %v572_v45 = vsub.f32 %v1802_v31, %v571_v39 }
 0x100   :  { %1176 = vmatmul.mubr.f32.vlgmr.msra.gmra.mxu0 %v464_v6  ;;  %1213 = vmatprep.subr.mxu0 %v1404_v8 }
 0x101   :  { %1214 = vmatpush3.msra.mxu0 %v1578_v57  ;;  %v573_v49 = vand.u32 4294901760, %v572_v45  ;;  %v578_v54 = vand.u32 4294901760, %v1811_v43  ;;  %1245 = vmatprep.mubr.msk.f32.mxu0 %vm1405_vm0, %v1404_v8 }
 0x102   :  { %1215 = vmatprep.subr.mxu0 %v1404_v8 }
 0x103   :  { %1207 = vmatpush3.msra.mxu1 %v573_v49  ;;  %1216 = vmatpush3.msra.mxu0 %v1614_v48  ;;  %v579_v59 = vsub.f32 %v1811_v43, %v578_v54 }
 0x104   :  { %1217 = vmatprep.subr.mxu0 %v1404_v8  ;;  %1208 = vmatprep.subr.mxu1 %v1404_v8 }
 0x105   :  { %1218 = vmatpush3.msra.mxu0 %v1631_v63  ;;  %v580_v2 = vand.u32 4294901760, %v579_v59 }
 0x106   :  { %1219 = vmatprep.subr.mxu0 %v1404_v8 }
 0x107   :  { %1209 = vmatpush3.msra.mxu1 %v580_v2  ;;  %1220 = vmatpush3.msra.mxu0 %v1620_v52 }
 0x108   :  { %1211 = vmatmul.mubr.f32.vlgmr.msra.gmra.mxu1 %v1763_v53  ;;  %1221 = vmatprep.subr.mxu0 %v1404_v8 }
 0x109   :  { %1248 = vmatprep.subr.mxu1 %v1404_v8  ;;  %1222 = vmatpush3.msra.mxu0 %v1628_v62 }
 0x10a   :  { %1249 = vmatpush3.msra.mxu1 %v1575_v55  ;;  %1223 = vmatprep.subr.mxu0 %v1404_v8 }
 0x10b   :  { %1250 = vmatprep.subr.mxu1 %v1404_v8  ;;  %1224 = vmatpush3.msra.mxu0 %v1648_v21 }
 0x10c   :  { %1251 = vmatpush3.msra.mxu1 %v1609_v42  ;;  %1225 = vmatprep.subr.mxu0 %v1404_v8 }
 0x10d   :  { %1252 = vmatprep.subr.mxu1 %v1404_v8  ;;  %1226 = vmatpush3.msra.mxu0 %v1674_v33 }
 0x10e   :  { %1253 = vmatpush3.msra.mxu1 %v1623_v56  ;;  %1227 = vmatprep.subr.mxu0 %v1404_v8 }
 0x10f   :  { %1254 = vmatprep.subr.mxu1 %v1404_v8  ;;  %1228 = vmatpush3.msra.mxu0 %v1661_v26 }
 0x110   :  { %1255 = vmatpush3.msra.mxu1 %v1605_v37  ;;  %1229 = vmatprep.subr.mxu0 %v1404_v8 }
 0x111   :  { %1256 = vmatprep.subr.mxu1 %v1404_v8  ;;  %1230 = vmatpush3.msra.mxu0 %v1700_v5 }
 0x112   :  { %1257 = vmatpush3.msra.mxu1 %v1611_v44  ;;  %1231 = vmatprep.subr.mxu0 %v1404_v8 }
 0x113   :  { %1258 = vmatprep.subr.mxu1 %v1404_v8  ;;  %1232 = vmatpush3.msra.mxu0 %v1717_v30 }
 0x114   :  { %1259 = vmatpush3.msra.mxu1 %v1640_v12  ;;  %1233 = vmatprep.subr.mxu0 %v1404_v8 }
 0x115   :  { %1260 = vmatprep.subr.mxu1 %v1404_v8  ;;  %1234 = vmatpush3.msra.mxu0 %v1730_v50 }
 0x116   :  { %1261 = vmatpush3.msra.mxu1 %v1663_v27  ;;  %1235 = vmatprep.subr.mxu0 %v1404_v8 }
 0x117   :  { %1262 = vmatprep.subr.mxu1 %v1404_v8  ;;  %1236 = vmatpush3.msra.mxu0 %v1745_v7 }
 0x118   :  { %1263 = vmatpush3.msra.mxu1 %v1650_v22  ;;  %1237 = vmatprep.subr.mxu0 %v1404_v8 }
 0x119   :  { %1264 = vmatprep.subr.mxu1 %v1404_v8  ;;  %1238 = vmatpush3.msra.mxu0 %v1767_v0 }
 0x11a   :  { %1265 = vmatpush3.msra.mxu1 %v1696_v1  ;;  %1239 = vmatprep.subr.mxu0 %v1404_v8 }
 0x11b   :  { %1266 = vmatprep.subr.mxu1 %v1404_v8  ;;  %1240 = vmatpush3.msra.mxu0 %v1784_v32 }
 0x11c   :  { %1267 = vmatpush3.msra.mxu1 %v1709_v23  ;;  %1241 = vmatprep.subr.mxu0 %v1404_v8 }
 0x11d   :  { %1268 = vmatprep.subr.mxu1 %v1404_v8  ;;  %1242 = vmatpush3.msra.mxu0 %v1802_v31 }
 0x11e   :  { %1269 = vmatpush3.msra.mxu1 %v1727_v47  ;;  %1243 = vmatprep.subr.mxu0 %v1404_v8 }
 0x11f   :  { %1270 = vmatprep.subr.mxu1 %v1404_v8  ;;  %1244 = vmatpush3.msra.mxu0 %v1811_v43 }
 0x120   :  { %1271 = vmatpush3.msra.mxu1 %v1742_v14  ;;  %1246 = vmatmul.mubr.f32.vlgmr.msra.gmra.mxu0 %v1773_v13 }
 0x121   :  { %1272 = vmatprep.subr.mxu1 %v1404_v8  ;;  %1283 = vmatprep.subr.mxu0 %v1404_v8 }
 0x122   :  { %1273 = vmatpush3.msra.mxu1 %v1761_v51  ;;  %1284 = vmatpush3.msra.mxu0 %v473_v60 }
 0x123   :  { %1274 = vmatprep.subr.mxu1 %v1404_v8  ;;  %1285 = vmatprep.subr.mxu0 %v1404_v8 }
 0x124   :  { %1275 = vmatpush3.msra.mxu1 %v1777_v20  ;;  %1286 = vmatpush3.msra.mxu0 %v480_v61 }
 0x125   :  { %1276 = vmatprep.subr.mxu1 %v1404_v8  ;;  %1287 = vmatprep.subr.mxu0 %v1404_v8 }
 0x126   :  { %1277 = vmatpush3.msra.mxu1 %v1799_v41  ;;  %1288 = vmatpush3.msra.mxu0 %v487_v17 }
 0x127   :  { %1278 = vmatprep.subr.mxu1 %v1404_v8  ;;  %1289 = vmatprep.subr.mxu0 %v1404_v8 }
 0x128   :  { %1279 = vmatpush3.msra.mxu1 %v1807_v35  ;;  %1280 = vmatprep.mubr.msk.f32.mxu1 %vm1405_vm0, %v1404_v8 }
 0x129   :  { %1290 = vmatpush3.msra.mxu0 %v494_v11  ;;  %1281 = vmatmul.mubr.f32.vlgmr.msra.gmra.mxu1 %v462_v15 }
 0x12a   :  { %1291 = vmatprep.subr.mxu0 %v1404_v8  ;;  %1318 = vmatprep.subr.mxu1 %v1404_v8 }
 0x12b   :  { %1292 = vmatpush3.msra.mxu0 %v501_v19  ;;  %1319 = vmatpush3.msra.mxu1 %v1575_v55 }
 0x12c   :  { %1293 = vmatprep.subr.mxu0 %v1404_v8  ;;  %1320 = vmatprep.subr.mxu1 %v1404_v8 }
 0x12d   :  { %1294 = vmatpush3.msra.mxu0 %v508_v28  ;;  %1321 = vmatpush3.msra.mxu1 %v1609_v42 }
 0x12e   :  { %1295 = vmatprep.subr.mxu0 %v1404_v8  ;;  %1322 = vmatprep.subr.mxu1 %v1404_v8 }
 0x12f   :  { %1296 = vmatpush3.msra.mxu0 %v515_v4  ;;  %1323 = vmatpush3.msra.mxu1 %v1623_v56  ;;  %v373_v56 = vpop.permute.xlu1 %372 }
 0x130   :  { %1297 = vmatprep.subr.mxu0 %v1404_v8  ;;  %1324 = vmatprep.subr.mxu1 %v1404_v8  ;;  %v378_v61 = vrot.slane %v373_v56, %v122_v38 }
 0x131   :  { %1298 = vmatpush3.msra.mxu0 %v522_v40  ;;  %1325 = vmatpush3.msra.mxu1 %v1605_v37 }
 0x132   :  { %1299 = vmatprep.subr.mxu0 %v1404_v8  ;;  %1326 = vmatprep.subr.mxu1 %v1404_v8 }
 0x133   :  { %1300 = vmatpush3.msra.mxu0 %v529_v18  ;;  %1327 = vmatpush3.msra.mxu1 %v1611_v44 }
 0x134   :  { %1301 = vmatprep.subr.mxu0 %v1404_v8  ;;  %1328 = vmatprep.subr.mxu1 %v1404_v8 }
 0x135   :  { %1302 = vmatpush3.msra.mxu0 %v536_v34  ;;  %1329 = vmatpush3.msra.mxu1 %v1640_v12 }
 0x136   :  { %1303 = vmatprep.subr.mxu0 %v1404_v8  ;;  %1330 = vmatprep.subr.mxu1 %v1404_v8 }
 0x137   :  { %1304 = vmatpush3.msra.mxu0 %v543_v58  ;;  %1331 = vmatpush3.msra.mxu1 %v1663_v27 }
 0x138   :  { %1305 = vmatprep.subr.mxu0 %v1404_v8  ;;  %1332 = vmatprep.subr.mxu1 %v1404_v8 }
 0x139   :  { %1306 = vmatpush3.msra.mxu0 %v550_v25  ;;  %1333 = vmatpush3.msra.mxu1 %v1650_v22 }
 0x13a   :  { %1307 = vmatprep.subr.mxu0 %v1404_v8  ;;  %1334 = vmatprep.subr.mxu1 %v1404_v8 }
 0x13b   :  { %1308 = vmatpush3.msra.mxu0 %v557_v9  ;;  %1335 = vmatpush3.msra.mxu1 %v1696_v1 }
 0x13c   :  { %1309 = vmatprep.subr.mxu0 %v1404_v8  ;;  %1336 = vmatprep.subr.mxu1 %v1404_v8 }
 0x13d   :  { %1310 = vmatpush3.msra.mxu0 %v564_v10  ;;  %1337 = vmatpush3.msra.mxu1 %v1709_v23 }
 0x13e   :  { %1311 = vmatprep.subr.mxu0 %v1404_v8  ;;  %1338 = vmatprep.subr.mxu1 %v1404_v8 }
 0x13f   :  { %1312 = vmatpush3.msra.mxu0 %v571_v39  ;;  %1339 = vmatpush3.msra.mxu1 %v1727_v47 }
 0x140   :  { %1313 = vmatprep.subr.mxu0 %v1404_v8  ;;  %1340 = vmatprep.subr.mxu1 %v1404_v8 }
 0x141   :  { %1314 = vmatpush3.msra.mxu0 %v578_v54  ;;  %1315 = vmatprep.mubr.msk.f32.mxu0 %vm1405_vm0, %v1404_v8 }
 0x142   :  { %1341 = vmatpush3.msra.mxu1 %v1742_v14  ;;  %1316 = vmatmul.mubr.f32.vlgmr.msra.gmra.mxu0 %v1763_v53 }
 0x143   :  { %1342 = vmatprep.subr.mxu1 %v1404_v8  ;;  %1350 = vmatprep.mubr.msk.f32.mxu1 %vm1405_vm0, %v1404_v8 }
 0x144   :  { %1343 = vmatpush3.msra.mxu1 %v1761_v51 }
 0x145   :  { %1344 = vmatprep.subr.mxu1 %v1404_v8 }
 0x146   :  { %1345 = vmatpush3.msra.mxu1 %v1777_v20 }
 0x147   :  { %1346 = vmatprep.subr.mxu1 %v1404_v8 }
 0x148   :  { %1347 = vmatpush3.msra.mxu1 %v1799_v41 }
 0x149   :  { %1348 = vmatprep.subr.mxu1 %v1404_v8 }
 0x14a   :  { %1349 = vmatpush3.msra.mxu1 %v1807_v35 }
 0x14b   :  { %1351 = vmatmul.mubr.f32.vlgmr.msra.gmra.mxu1 %v1763_v53 }
 0x1c0   :  { %v466_v55 = vpop.f32.mrf.mxu0 }
 0x1c1   :  { %v467_v62 = vadd.f32 %v466_v55, %v378_v61 }
 0x1c2   :  { %v1177_v57 = vpop.f32.mrf.mxu0 }
 0x1c8   :  { %v617_v60 = vpop.f32.mrf.mxu1 }
 0x1c9   :  { %v618_v11 = vadd.f32 %v617_v60, %v467_v62 }
 0x1ca   :  { %v1212_v37 = vpop.f32.mrf.mxu1 }
 0x1e0   :  { %v721_v42 = vpop.f32.mrf.mxu0 }
 0x1e1   :  { %v722_v12 = vadd.f32 %v721_v42, %v618_v11 }
 0x1e2   :  { %v1247_v44 = vpop.f32.mrf.mxu0 }
 0x1e9   :  { %v810_v48 = vpop.f32.mrf.mxu1 }
 0x1ea   :  { %v811_v17 = vadd.f32 %v810_v48, %v722_v12 }
 0x1eb   :  { %v1282_v52 = vpop.f32.mrf.mxu1 }
 0x202   :  { %v929_v63 = vpop.f32.mrf.mxu0 }
 0x203   :  { %v930_v19 = vadd.f32 %v929_v63, %v811_v17 }
 0x204   :  { %v1317_v8 = vpop.f32.mrf.mxu0 }
 0x20b   :  { %v1016_v21 = vpop.f32.mrf.mxu1 }
 0x20c   :  { %v1017_v22 = vadd.f32 %v1016_v21, %v930_v19 }
 0x20d   :  { %v1352_v26 = vpop.f32.mrf.mxu1 }
 0x20e   :  { %v1020_v27 = vsub.f32 0.0, %v1017_v22 }
 0x210   :  { %v1021_v28 = vmul.f32 1.442695, %v1020_v27 }
 0x212   :  { %1376 = vpow2.f32 %v1021_v28 }
 0x21f   :  { %v1377_v33 = vpop.eup %1376 }
 0x220   :  { %v1023_v40 = vadd.f32 1.0, %v1377_v33 }
 0x222   :  { %1378 = vrcp.f32 %v1023_v40 }
 0x22f   :  { %v1379_v36 = vpop.eup %1378 }
 0x230   :  { %1026 = vst [vmem:[#allocation3] sm:$0x1] %v1379_v36 }
 0x231   :  { %1391 = shalt.err (!%p1388_p4)
}
 0x232   :  { %1036 = dma.vmem_to_hbm [thread:$0]  %s1034_s7, 16, %s1990_s5, [#allocation4]  }
 0x233   :  { %1400 = dma.done.wait [#allocation4], 16  }
 0x234   :  { %1401 = vsyncadd [#allocation4], 4294967280 }
 0x235   :  { %1040 = vsyncpa [#allocation4], 1 }

</bundles_post_ra>
